<compile_context>
chip_gen: v7x
topology: tpu7x:2x2x1
jax: 0.10.0
libtpu: 0.0.40
codegen_flags: <defaults>
</compile_context>

<pallas_src>
import jax
import jax.numpy as jnp
import numpy as np
from jax import lax
from jax.experimental import pallas as pl
from jax.experimental.pallas import tpu as pltpu

EPS = 1e-5


def _round_up(x, m):
    return (x + m - 1) // m * m


def _layernorm(v, gamma, beta):
    mu = jnp.mean(v, axis=-1, keepdims=True)
    var = jnp.mean((v - mu) ** 2, axis=-1, keepdims=True)
    return (v - mu) * lax.rsqrt(var + EPS) * gamma + beta


# ----------------------------------------------------------------------------
# Kernel 1: router.  grid=(T//TM,), "parallel".
# Emits the shared normalization x_hat = (x - mu)*rsqrt(var + eps) (reused by
# every expert: the LN affines are folded into the Linear weights in the
# wrapper) and the router logits in f32.
# ----------------------------------------------------------------------------
def _router_kernel(x_ref, wr_ref, br_ref, xhat_ref, logits_ref):
    x = x_ref[...].astype(jnp.float32)                       # (TM, D)
    mu = jnp.mean(x, axis=-1, keepdims=True)
    var = jnp.mean((x - mu) ** 2, axis=-1, keepdims=True)
    xh = (x - mu) * lax.rsqrt(var + EPS)                     # shared x_hat
    xhat_ref[...] = xh.astype(xhat_ref.dtype)
    logits_ref[...] = (
        jnp.dot(xh, wr_ref[...], preferred_element_type=jnp.float32)
        + br_ref[...]
    )


# ----------------------------------------------------------------------------
# Kernel 2: experts.  grid=(T//TM, E), ("parallel", "arbitrary").
# Per (token tile, expert): two MXU matmuls + GELU, gate-weighted accumulate
# into an f32 VMEM scratch; output block written once at the last expert.
# ----------------------------------------------------------------------------
def _moe_expert_kernel(
    cnt_ref,     # SMEM (nT, E) int32  scalar-prefetched routed-token counts
    xh_ref,      # (TM, D)   shared normalized tokens (invariant across e)
    gate_ref,    # (TM, E)   dense f32 gates for this tile (invariant across e)
    w1_ref,      # (1, D, I) expert-e first linear (LN affine folded in)
    b1_ref,      # (1, 1, I) f32
    w2_ref,      # (1, I, D)
    b2_ref,      # (1, 1, D) f32
    out_ref,     # (TM, D)   output block, resident across the expert axis
    acc_ref,     # VMEM (TM, D) f32 accumulator scratch
):
    i = pl.program_id(0)
    e = pl.program_id(1)

    @pl.when(e == 0)
    def _():
        acc_ref[...] = jnp.zeros_like(acc_ref)

    # Skip experts that received no tokens in this tile: their dense gates are
    # exactly zero, so skipping is lossless and saves both matmuls.
    @pl.when(cnt_ref[i, e] > 0)
    def _():
        xh = xh_ref[...]
        w1 = w1_ref[0]
        h = jnp.dot(xh, w1, preferred_element_type=jnp.float32) + b1_ref[0]
        h = jax.nn.gelu(h, approximate=True)                 # tanh GELU (EUP)
        w2 = w2_ref[0]
        y = (jnp.dot(h.astype(w2.dtype), w2, preferred_element_type=jnp.float32)
             + b2_ref[0])                                    # (TM, D) f32
        # Select this expert's gate column from the lane-dense (TM, E) tile.
        g = gate_ref[...]                                    # (TM, E) f32
        lane = lax.broadcasted_iota(jnp.int32, g.shape, 1)
        gate = jnp.sum(jnp.where(lane == e, g, 0.0), axis=-1, keepdims=True)
        acc_ref[...] += gate * y
        # TODO(synk): training-mode Dropout(0.1) not implemented (eval mode).

    @pl.when(e == pl.num_programs(1) - 1)
    def _():
        out_ref[...] = acc_ref[...].astype(out_ref.dtype)


# ----------------------------------------------------------------------------
# Wrapper
# ----------------------------------------------------------------------------
def adaptive_expert_system(x, params, experts_per_token=2, token_tile=None,
                           compute_dtype=None):
    """x: (B, L, D). Returns (B, L, D) in x.dtype."""
    B, L, D = x.shape
    E, _, I = params["w1"].shape
    k = min(E, experts_per_token)
    T = B * L
    f32 = jnp.float32
    cdt = compute_dtype if compute_dtype is not None else x.dtype

    # Token-tile size: multiple of 8 sublanes; bounds VMEM at production T.
    # (Re-derive per generation: ~256 fits v5e/v6e/v7x budgets for typical D, I.)
    if token_tile is None:
        token_tile = 256
    TM = min(_round_up(token_tile, 8), _round_up(T, 8))
    Tp = _round_up(T, TM)
    nT = Tp // TM

    x2 = x.reshape(T, D)
    if Tp != T:
        x2 = jnp.pad(x2, ((0, Tp - T), (0, 0)))   # pad rows get zero gates

    # ---- fold the router LayerNorm affine into the router Linear (f32) ----
    # LN(x) @ W + b  ==  x_hat @ (g[:,None] * W) + (beta @ W + b)
    g_r = jnp.swapaxes(params["router_g"].astype(f32), 0, 1)        # (D, 1)
    wr = params["router_w"].astype(f32)                              # (D, E)
    wr_f = g_r * wr
    br_f = (params["router_bias"].astype(f32)
            + params["router_b"].astype(f32) @ wr)                   # (1, E)

    x_hat, logits = pl.pallas_call(
        _router_kernel,
        out_shape=[jax.ShapeDtypeStruct((Tp, D), cdt),
                   jax.ShapeDtypeStruct((Tp, E), f32)],
        grid=(nT,),
        in_specs=[pl.BlockSpec((TM, D), lambda i: (i, 0)),
                  pl.BlockSpec((D, E), lambda i: (0, 0)),
                  pl.BlockSpec((1, E), lambda i: (0, 0))],
        out_specs=[pl.BlockSpec((TM, D), lambda i: (i, 0)),
                   pl.BlockSpec((TM, E), lambda i: (i, 0))],
        compiler_params=pltpu.CompilerParams(
            dimension_semantics=("parallel",)),
    )(x2, wr_f, br_f)

    # ---- top-k routing + dense gate scatter (tiny; plain JAX, kept in f32) ----
    vals, idx = lax.top_k(logits[:T], k)                             # (T, k)
    w = jax.nn.softmax(vals, axis=-1)                                # f32
    gates = jnp.einsum("tk,tke->te", w,
                       jax.nn.one_hot(idx, E, dtype=f32))            # (T, E)
    if Tp != T:
        gates = jnp.pad(gates, ((0, Tp - T), (0, 0)))
    # Per-(token-tile, expert) routed-token counts for the empty-expert skip.
    counts = (gates.reshape(nT, TM, E) > 0).sum(axis=1).astype(jnp.int32)

    # ---- fold every expert LayerNorm affine into its first Linear ----
    # LN_e(x) @ w1_e + b1_e == x_hat @ (g_e[:,None]*w1_e) + (beta_e @ w1_e + b1_e)
    ln_g = jnp.swapaxes(params["ln_g"].astype(f32), 1, 2)            # (E, D, 1)
    w1 = params["w1"].astype(f32)                                    # (E, D, I)
    w1_f = (ln_g * w1).astype(cdt)
    b1_f = params["b1"].astype(f32) + jnp.einsum(
        "eud,edi->eui", params["ln_b"].astype(f32), w1)              # (E, 1, I)
    w2_c = params["w2"].astype(cdt)
    b2_c = params["b2"].astype(f32)

    # ---- experts: (token tiles x experts), f32 scratch accumulator ----
    out2 = pl.pallas_call(
        _moe_expert_kernel,
        out_shape=jax.ShapeDtypeStruct((Tp, D), x.dtype),
        grid_spec=pltpu.PrefetchScalarGridSpec(
            num_scalar_prefetch=1,
            grid=(nT, E),
            in_specs=[
                pl.BlockSpec((TM, D), lambda i, e, cnt: (i, 0)),      # x_hat
                pl.BlockSpec((TM, E), lambda i, e, cnt: (i, 0)),      # gates
                pl.BlockSpec((1, D, I), lambda i, e, cnt: (e, 0, 0)),  # w1'
                pl.BlockSpec((1, 1, I), lambda i, e, cnt: (e, 0, 0)),  # b1'
                pl.BlockSpec((1, I, D), lambda i, e, cnt: (e, 0, 0)),  # w2
                pl.BlockSpec((1, 1, D), lambda i, e, cnt: (e, 0, 0)),  # b2
            ],
            out_specs=pl.BlockSpec((TM, D), lambda i, e, cnt: (i, 0)),
            scratch_shapes=[pltpu.VMEM((TM, D), jnp.float32)],
        ),
        compiler_params=pltpu.CompilerParams(
            dimension_semantics=("parallel", "arbitrary")),
    )(counts, x_hat, gates, w1_f, b1_f, w2_c, b2_c)

    return out2[:T].reshape(B, L, D)


# ----------------------------------------------------------------------------
# Pure-JAX reference mirroring the PyTorch module (eval mode, unfused LNs)
# ----------------------------------------------------------------------------
def reference_forward(x, params, experts_per_token=2):
    E = params["w1"].shape[0]
    HI = lax.Precision.HIGHEST
    xn = _layernorm(x, params["router_g"], params["router_b"])
    logits = (jnp.dot(xn, params["router_w"], precision=HI)
              + params["router_bias"]).astype(jnp.float32)
    vals, idx = lax.top_k(logits, experts_per_token)
    weights = jax.nn.softmax(vals, axis=-1).astype(x.dtype)
    out = jnp.zeros_like(x)
    for slot in range(experts_per_token):
        for e in range(E):
            mask = (idx[..., slot] == e)[..., None]                    # (B, L, 1)
            xe = _layernorm(x, params["ln_g"][e], params["ln_b"][e])
            h = jax.nn.gelu(
                jnp.dot(xe, params["w1"][e], precision=HI) + params["b1"][e],
                approximate=True,
            )
            ye = jnp.dot(h, params["w2"][e], precision=HI) + params["b2"][e]
            out = out + jnp.where(mask, weights[..., slot:slot + 1] * ye, 0.0)
    return out


def init_params(key, D, I, E):
    ks = jax.random.split(key, 10)
    rb = 1.0 / np.sqrt(D)     # router Linear(D, E) init bound
    b1 = 1.0 / np.sqrt(D)     # expert Linear(D, I)
    b2 = 1.0 / np.sqrt(I)     # expert Linear(I, D)
    u = lambda k, shape, b: jax.random.uniform(k, shape, jnp.float32, -b, b)
    return {
        # router LayerNorm (slightly perturbed so the test is meaningful)
        "router_g": 1.0 + 0.01 * jax.random.normal(ks[0], (1, D), jnp.float32),
        "router_b": 0.01 * jax.random.normal(ks[1], (1, D), jnp.float32),
        # router Linear, stored (D_in, E_out)
        "router_w": u(ks[2], (D, E), rb),
        "router_bias": u(ks[3], (1, E), rb),
        # per-expert LayerNorm params, stacked on a leading expert axis
        "ln_g": 1.0 + 0.01 * jax.random.normal(ks[4], (E, 1, D), jnp.float32),
        "ln_b": 0.01 * jax.random.normal(ks[5], (E, 1, D), jnp.float32),
        # per-expert Linear weights, stored (E, D_in, D_out)
        "w1": u(ks[6], (E, D, I), b1),
        "b1": u(ks[7], (E, 1, I), b1),
        "w2": u(ks[8], (E, I, D), b2),
        "b2": u(ks[9], (E, 1, D), b2),
    }


if __name__ == "__main__":
    B, L, D, I, E, K = 2, 8, 32, 64, 8, 2
    key = jax.random.PRNGKey(0)
    kx, kp = jax.random.split(key)

    x = jax.random.normal(kx, (B, L, D), jnp.float32)
    params = init_params(kp, D, I, E)

    # token_tile=8 so the 16 tokens span two token tiles (exercises the grid).
    y = jax.block_until_ready(
        adaptive_expert_system(x, params, experts_per_token=K, token_tile=8))
    y_ref = reference_forward(x, params, experts_per_token=K)

    np.testing.assert_allclose(np.asarray(y), np.asarray(y_ref),
                               rtol=1e-4, atol=1e-4)
    print("KERNEL_OK")
</pallas_src>

<mosaic_0001>
module attributes {stable_mosaic.version = 11 : i64} {
  func.func @_router_kernel(%arg0: i32, %arg1: memref<8x32xf32, #tpu.memory_space<vmem>>, %arg2: memref<32x8xf32, #tpu.memory_space<vmem>>, %arg3: memref<1x8xf32, #tpu.memory_space<vmem>>, %arg4: memref<8x32xf32, #tpu.memory_space<vmem>>, %arg5: memref<8x8xf32, #tpu.memory_space<vmem>>) attributes {dimension_semantics = [#tpu.dimension_semantics<parallel>], iteration_bounds = array<i64: 2>, scalar_prefetch = 0 : i64, scratch_operands = 0 : i64, tpu.core_type = #tpu.core_type<tc>, window_params = [{transform_indices = @transform_0, window_bounds = array<i64: 8, 32>}, {pipeline_mode = #tpu.pipeline_mode<synchronous>, transform_indices = @transform_1, window_bounds = array<i64: 32, 8>}, {pipeline_mode = #tpu.pipeline_mode<synchronous>, transform_indices = @transform_2, window_bounds = array<i64: 1, 8>}, {transform_indices = @transform_3, window_bounds = array<i64: 8, 32>}, {transform_indices = @transform_4, window_bounds = array<i64: 8, 8>}]} {
    %c0 = arith.constant 0 : index
    %c0_0 = arith.constant 0 : index
    %0 = vector.load %arg1[%c0, %c0_0] : memref<8x32xf32, #tpu.memory_space<vmem>>, vector<8x32xf32>
    %cst = arith.constant dense<0.000000e+00> : vector<8xf32>
    %1 = vector.multi_reduction <add>, %0, %cst [1] : vector<8x32xf32> to vector<8xf32>
    %2 = vector.shape_cast %1 : vector<8xf32> to vector<8x1xf32>
    %cst_1 = arith.constant 3.200000e+01 : f32
    %3 = vector.broadcast %cst_1 : f32 to vector<8x1xf32>
    %4 = arith.divf %2, %3 : vector<8x1xf32>
    %5 = vector.broadcast %4 : vector<8x1xf32> to vector<8x32xf32>
    %6 = arith.subf %0, %5 : vector<8x32xf32>
    %7 = arith.mulf %6, %6 : vector<8x32xf32>
    %cst_2 = arith.constant dense<0.000000e+00> : vector<8xf32>
    %8 = vector.multi_reduction <add>, %7, %cst_2 [1] : vector<8x32xf32> to vector<8xf32>
    %9 = vector.shape_cast %8 : vector<8xf32> to vector<8x1xf32>
    %cst_3 = arith.constant 3.200000e+01 : f32
    %10 = vector.broadcast %cst_3 : f32 to vector<8x1xf32>
    %11 = arith.divf %9, %10 : vector<8x1xf32>
    %12 = vector.broadcast %4 : vector<8x1xf32> to vector<8x32xf32>
    %13 = arith.subf %0, %12 : vector<8x32xf32>
    %cst_4 = arith.constant 9.99999974E-6 : f32
    %14 = vector.broadcast %cst_4 : f32 to vector<8x1xf32>
    %15 = arith.addf %11, %14 : vector<8x1xf32>
    %16 = math.rsqrt %15 : vector<8x1xf32>
    %17 = vector.broadcast %16 : vector<8x1xf32> to vector<8x32xf32>
    %18 = arith.mulf %13, %17 : vector<8x32xf32>
    %c0_5 = arith.constant 0 : index
    %c0_6 = arith.constant 0 : index
    %19 = vector.load %arg4[%c0_5, %c0_6] : memref<8x32xf32, #tpu.memory_space<vmem>>, vector<8x32xf32>
    tpu.vector_store %arg4[%c0_5, %c0_6], %18 {strides = array<i32>} : memref<8x32xf32, #tpu.memory_space<vmem>>, vector<8x32xf32>,
    %c0_7 = arith.constant 0 : index
    %c0_8 = arith.constant 0 : index
    %20 = vector.load %arg2[%c0_7, %c0_8] : memref<32x8xf32, #tpu.memory_space<vmem>>, vector<32x8xf32>
    %cst_9 = arith.constant dense<0.000000e+00> : vector<8x8xf32>
    %21 = tpu.matmul %18, %20, %cst_9 {dimension_numbers = #tpu.dot_dimension_numbers<[1], [0], [0], [1], [0, 0, 1, 1], [], []>} : vector<8x32xf32>, vector<32x8xf32>, vector<8x8xf32> -> vector<8x8xf32>
    %c0_10 = arith.constant 0 : index
    %c0_11 = arith.constant 0 : index
    %22 = vector.load %arg3[%c0_10, %c0_11] : memref<1x8xf32, #tpu.memory_space<vmem>>, vector<1x8xf32>
    %23 = vector.broadcast %22 : vector<1x8xf32> to vector<8x8xf32>
    %24 = arith.addf %21, %23 : vector<8x8xf32>
    %c0_12 = arith.constant 0 : index
    %c0_13 = arith.constant 0 : index
    %25 = vector.load %arg5[%c0_12, %c0_13] : memref<8x8xf32, #tpu.memory_space<vmem>>, vector<8x8xf32>
    tpu.vector_store %arg5[%c0_12, %c0_13], %24 {strides = array<i32>} : memref<8x8xf32, #tpu.memory_space<vmem>>, vector<8x8xf32>,
    return
  }
  func.func @transform_0(%arg0: i32) -> (i32, i32) {
    %c0_i32 = arith.constant 0 : i32
    %c0_i32_0 = arith.constant 0 : i32
    return %arg0, %c0_i32 : i32, i32
  }
  func.func @transform_1(%arg0: i32) -> (i32, i32) {
    %c0_i32 = arith.constant 0 : i32
    %c0_i32_0 = arith.constant 0 : i32
    %c0_i32_1 = arith.constant 0 : i32
    return %c0_i32, %c0_i32_0 : i32, i32
  }
  func.func @transform_2(%arg0: i32) -> (i32, i32) {
    %c0_i32 = arith.constant 0 : i32
    %c0_i32_0 = arith.constant 0 : i32
    %c0_i32_1 = arith.constant 0 : i32
    return %c0_i32, %c0_i32_0 : i32, i32
  }
  func.func @transform_3(%arg0: i32) -> (i32, i32) {
    %c0_i32 = arith.constant 0 : i32
    %c0_i32_0 = arith.constant 0 : i32
    return %arg0, %c0_i32 : i32, i32
  }
  func.func @transform_4(%arg0: i32) -> (i32, i32) {
    %c0_i32 = arith.constant 0 : i32
    %c0_i32_0 = arith.constant 0 : i32
    return %arg0, %c0_i32 : i32, i32
  }
}

</mosaic_0001>

<bundles_post_ra>
// kernel: tpu_custom_call.1
= control target key start
LH: loop header
LB: loop body
LE: loop exit
PB: predicated region body
PF: predicated region fallthrough
CT: control target
= control target key end

     0   :  { %10 = vsyncpa [#allocation3], 0  ;;  %s706_s0 = inlined_call_operand.vmem [shape: f32[16,32], index: 0, kind: input, shape index: {}]   ;;  %s707_s1 = inlined_call_operand.vmem [shape: f32[32,8], index: 1, kind: input, shape index: {}]   ;;  %s708_s2 = inlined_call_operand.vmem [shape: f32[1,8], index: 2, kind: input, shape index: {}]   ;;  %s709_s3 = inlined_call_operand.hbm [shape: f32[16,32], index: 3, kind: output, shape index: {0}]   ;;  %s710_s4 = inlined_call_operand.vmem [shape: f32[16,8], index: 4, kind: output, shape index: {1}]  }
   0x1   :  { %12 = vsyncpa [#allocation3 + $0x1], 0  ;;  %s583_s15 = smov 0   ;;  %s585_s16 = smov 0  }
   0x2   :  { %s587_s17 = smov 0   ;;  %s589_s18 = smov 0  }
   0x3 LB: > { %s604_s19 = sadd.s32 4294967295, %s552_s18   ;;  %s411_s20 = sadd.s32 4294967294, %s552_s18   ;;  %s552_s18 = sphi %s589_s18, %s716_s18   ;;  %s548_s17 = sphi %s587_s17, %s715_s17   ;;  %s544_s16 = sphi %s585_s16, %s714_s16   ;;  %s540_s15 = sphi %s583_s15, %s713_s15  }
   0x4   : > { %s608_s21 = sadd.s32 1, %s552_s18   ;;  %s93_s22 = sadd.s32 1, %s548_s17 }
   0x5   : > { %s90_s23 = ssub.s32 %s552_s18, %s608_s21  ;;  %p103_p0 = scmp.ne.s32.totalorder %s548_s17, %s544_s16 }
   0x6   : > { %p91_p1 = scmp.eq.s32.totalorder %s90_s23, 0  ;;  %p104_p2 = scmp.eq.s32.totalorder %s604_s19, 1 }
   0x7   : > { %p109_p3 = scmp.ne.s32.totalorder %s544_s16, %s540_s15  ;;  %p110_p4 = scmp.eq.s32.totalorder %s411_s20, 1 }
   0x8   : > { %s619_s24 = scalar_select %p91_p1, %s548_s17, %s93_s22  }
   0x9   : > { %p621_p5 = por %p104_p2, %p103_p0  ;;  %p625_p6 = por %p110_p4, %p109_p3 }
   0xa   : > { %p414_p7 = scmp.ge.s32.totalorder %s552_s18, 1  ;;  %p167_p8 = scmp.lt.s32.totalorder %s552_s18, 3 }
   0xc   : > { %p168_p9 = pnand %p414_p7, %p167_p8 }
   0xd   : > { %p196_p10 = scmp.lt.s32.totalorder (!%p168_p9), %s604_s19, 1  ;;  %vm205_vm0 = vcmask (!%p168_p9), 261120   ;;  %v221_v7 = vld [vmem:[%s707_s1] sm:$0xff] (!%p168_p9)  ;;  %v222_v8 = vld [vmem:[%s707_s1 + $0x8] sm:$0xff] (!%p168_p9)  ;;  %v223_v9 = vld [vmem:[%s707_s1 + $0x10] sm:$0xff] (!%p168_p9)  ;;  %v554_v10 = vmov (!%p168_p9), 0.0|0.0  }
   0xe   : > { %171 = sbr.rel (%p168_p9) target bundleno = 550 (0x226), region = 32  ;;  %440 = vmatprep.subr.bf16.mxu0 (!%p168_p9), %v554_v10  ;;  %v441_v11 = vpack.c.bf16 (!%p168_p9), %v222_v8, %v221_v7  ;;  %v224_v12 = vld [vmem:[%s707_s1 + $0x18] sm:$0xff] (!%p168_p9)  ;;  %vm555_vm1 = vmmov (!%p168_p9), 0   ;;  %v556_v13 = vmov (!%p168_p9), 0.0   ;;  %s187_s14 = sand.u32 (!%p168_p9), 1, %s544_s16  }
   0xf   : > { %437 = vmatprep.mubr.msk.f32.mxu0 (!%p168_p9), %vm555_vm1, %v556_v13  ;;  %v444_v14 = vpack.c.bf16 (!%p168_p9), %v224_v12, %v223_v9  ;;  %s415_s20 = sshll.u32 (!%p168_p9), %s187_s14, 3  ;;  %s421_s23 = sshll.u32 (!%p168_p9), %s604_s19, 7 }
  0x10   : > { %442 = vmatpush3.bf16.msra.mxu0 (!%p168_p9), %v441_v11  ;;  %s189_s22 = scalar_lea.vmem (!%p168_p9), [#allocation2], %s415_s20  ;;  %s662_s6 = scalar_lea.hbm (!%p168_p9), %s709_s3, %s421_s23 }
  0x11   : > { %443 = vmatprep.subr.bf16.mxu0 (!%p168_p9), %v554_v10  ;;  %s325_s29 = sshll.u32 (!%p168_p9), %s189_s22, 4  ;;  %s308_s7 = scalar_lea.sflag (!%p168_p9), [#allocation3], %s187_s14  ;;  %s326_s29 = int_to_ptr.vmem [resolvable:$true] %s325_s29 }
  0x12   : > { %s490_s8 = scalar_lea.vmem (!%p168_p9), %s326_s29, 128  ;;  %s557_s9 = smov (!%p168_p9), [#allocation2]  }
  0x13   : > { %p491_p11 = scmp.ne.s32.totalorder (!%p168_p9), %s326_s29, %s490_s8  ;;  %s494_s10 = sshll.u32 (!%p168_p9), %s557_s9, 4  ;;  %s495_s10 = int_to_ptr.vmem [resolvable:$false] %s494_s10 }
  0x14   : > { %445 = vmatpush3.bf16.msra.mxu0 (!%p168_p9), %v444_v14  ;;  %s496_s11 = scalar_lea.vmem (!%p168_p9), %s495_s10, 256  ;;  %p497_p0 = scmp.lt.s32.totalorder (!%p168_p9), %s326_s29, %s495_s10 }
  0x15   : > { %s633_s27 = scalar_select %p196_p10, %s604_s19, 1 }
  0x16   : > { %p492_p12 = pnand %p491_p11, %p621_p5  ;;  %p498_p1 = scmp.lt.s32.totalorder %s496_s11, %s490_s8 }
  0x17   : > { %s416_s28 = sshll.u32 %s633_s27, 3 }
  0x18   : > { %s199_s5 = scalar_lea.vmem %s706_s0, %s416_s28  ;;  %p493_p13 = pneg %p492_p12 }
  0x19   : > { %v204_v0 = vld [vmem:[%s199_s5] sm:$0xff]  ;;  %p499_p2 = por %p498_p1, %p497_p0 }
  0x1a   : > { %v206_v1 = vsel %vm205_vm0, %v204_v0, 0.0 }
  0x1b   : > { %207 = vadd.xlane.f32.xlu0 %v206_v1  ;;  %p500_p3 = pnand %p499_p2, %p493_p13 }
  0xa8   : > { %v208_v2 = vpop.xlane.xlu0 %207 }
  0xa9   : > { %v210_v3 = vmul.f32 0.03125, %v208_v2 }
  0xab   : > { %v211_v4 = vsub.f32 %v204_v0, %v210_v3 }
  0xad   : > { %v212_v5 = vmul.f32 %v211_v4, %v211_v4 }
  0xaf   : > { %v213_v6 = vsel %vm205_vm0, %v212_v5, 0.0 }
  0xb0   : > { %214 = vadd.xlane.f32.xlu0 %v213_v6 }
 0x13d   : > { %v215_v15 = vpop.xlane.xlu0 %214 }
 0x13e   : > { %v216_v16 = vmul.f32 0.03125, %v215_v15 }
 0x140   : > { %v217_v17 = vadd.f32 1e-05, %v216_v16 }
 0x142   : > { %488 = vrsqrt.f32 %v217_v17 }
 0x14c   : > { %v489_v18 = vpop.eup %488 }
 0x14d   : > { %v219_v19 = vmul.f32 %v489_v18, %v211_v4 }
 0x14f   : > { %438 = vmatmul.mubr.msk.f32.vlgmr.msra.gmra.mrb[0].mxu0 %vm205_vm0, %v219_v19  ;;  %220 = vst.msk [vmem:[%s189_s22] sm:$0xff] %vm205_vm0, %v219_v19 }
 0x150   : > { %503 = shalt.err (!%p500_p3)
}
 0x151   : > { %s504_s19 = scalar_lea.hbm %s662_s6, 128  ;;  %s508_s14 = scalar_lea.hbm %s709_s3, 256 }
 0x152   : > { %p505_p4 = scmp.ne.s32.totalorder %s662_s6, %s504_s19  ;;  %p509_p9 = scmp.lt.u32.totalorder %s662_s6, %s709_s3 }
 0x153   : > { %p510_p10 = scmp.lt.u32.totalorder %s508_s14, %s504_s19  ;;  %p512_p12 = scmp.lt.u32.totalorder %s504_s19, %s662_s6 }
 0x154   : > { %p506_p7 = pnand %p505_p4, %p621_p5 }
 0x155   : > { %p511_p11 = por %p510_p10, %p509_p9 }
 0x156   : > { %p507_p8 = pneg %p506_p7 }
 0x157   : > { %p513_p13 = por %p512_p12, %p511_p11 }
 0x159   : > { %p514_p0 = pnand %p513_p13, %p507_p8 }
 0x15b   : > { %517 = shalt.err (!%p514_p0)
}
 0x15c   : > { %446 = dma.vmem_to_hbm [thread:$0]  (%p621_p5), %s326_s29, 128, %s662_s6, %s308_s7   ;;  %v418_v20 = vld [vmem:[%s708_s2] ss:$0 sm:$0xff]  ;;  %vm305_vm2 = vcmask 64512  }
 0x15d   : > { %s203_s9 = scalar_lea.vmem %s710_s4, %s416_s28 }
 0x222   : > { %v301_v21 = vpop.f32.mrb[0].mxu0 }
 0x223   : > { %v302_v22 = vadd.f32 %v418_v20, %v301_v21  ;;  %v439_v23 = vpop.f32.mrb[1].mxu0 }
 0x225   : > { %306 = vst.msk [vmem:[%s203_s9] sm:$0xff] %vm305_vm2, %v302_v22 }
 0x226 PF: > { %p452_p1 = scmp.ge.s32.totalorder %s552_s18, 2  ;;  %s340_s25 = sand.u32 1, %s540_s15  }
 0x227   : > { %s341_s29 = scalar_lea.sflag [#allocation3], %s340_s25 }
 0x228   : > { %p449_p5 = pnand %p452_p1, %p625_p6 }
 0x22a   : > { %535 = dma.done.wait (!%p449_p5), %s341_s29, 128  }
 0x22b   : > { %537 = vsyncadd (!%p449_p5), %s341_s29, 4294967168  ;;  %p15_p2 = scmp.ge.s32.totalorder %s608_s21, 4   ;;  %s713_s15 = smov %s544_s16 }
 0x22c   : > { %s714_s16 = smov %s548_s17  ;;  %s715_s17 = smov %s619_s24 }
 0x22d   : > { %s716_s18 = smov %s608_s21  ;;  %17 = sbr.rel (!%p15_p2) target bundleno = 3 (0x3), region = 79 }
 0x234   :  { %353 = vsyncpa [#allocation3], 1 }
 0x235   :  { %355 = vsyncpa [#allocation3 + $0x1], 1 }

</bundles_post_ra>
